<compile_context>
chip_gen: v5e
topology: v5e:2x2
jax: 0.10.0
libtpu: 0.0.40
codegen_flags: <defaults>
</compile_context>

<pallas_src>
import functools

import jax
import jax.numpy as jnp
from jax import lax
from jax.experimental import pallas as pl
from jax.experimental.pallas import tpu as pltpu

PACK = 2  # images packed side by side along the lane axis (PACK * W * C = 128 lanes)


def _band_weights(w_oihw, W, pack):
    """Fold kx taps + channel mixing of a 3x3 'same' conv into three banded
    (W*C, W*C) matrices (one per ky tap), then block-diagonalize for `pack`
    lane-packed images.

    band[ky][wi*C + ci, wo*C + co] = w[co, ci, ky, kx] with kx = wi - wo + 1
    (zero outside the band => implicit zero padding at the left/right edges).
    """
    C_out, C_in, KH, KW = w_oihw.shape
    assert KH == 3 and KW == 3 and C_out == C_in
    eye_pack = jnp.eye(pack, dtype=jnp.float32)
    mats = []
    for ky in range(3):
        m = jnp.zeros((W * C_in, W * C_out), jnp.float32)
        for kx in range(3):
            shift = jnp.eye(W, k=1 - kx, dtype=jnp.float32)   # wi == wo + kx - 1
            blk = w_oihw[:, :, ky, kx].astype(jnp.float32).T  # (ci, co)
            m = m + jnp.kron(shift, blk)
        mats.append(jnp.kron(eye_pack, m))  # block-diag: no cross-image mixing
    return jnp.stack(mats).astype(jnp.bfloat16)  # (3, pack*W*C, pack*W*C)


def prepare_residual_block_params(w0, b0, w1, b1, *, W, pack=PACK):
    """Host-side prep, run once per parameter update (hoisted out of the forward)."""
    C = w0.shape[0]
    L = pack * W * C
    b0r = jnp.tile(b0.astype(jnp.float32), pack * W).reshape(1, L)
    b1r = jnp.tile(b1.astype(jnp.float32), pack * W).reshape(1, L)
    return _band_weights(w0, W, pack), b0r, _band_weights(w1, W, pack), b1r


def _residual_block_kernel(x_ref, w0_ref, b0_ref, w1_ref, b1_ref, o_ref, *, H, L):
    """One packed pair of images per grid step.

    x_ref  : (1, H+2, L) f32   lane-dense input slab, zero row above/below
    w0_ref : (3, L, L)   bf16  conv0 banded + block-diag weights (one per ky tap)
    b0_ref : (1, L)      f32   conv0 bias, tiled per spatial column / packed image
    w1_ref : (3, L, L)   bf16  conv1 banded + block-diag weights
    b1_ref : (1, L)      f32   conv1 bias
    o_ref  : (1, H, L)   f32   output slab (128-lane dense -> unmasked stores)
    """
    xp = x_ref[0]                      # (H+2, L) f32, pad rows are zero
    rx = jnp.maximum(xp, 0.0)          # relu(x); zero rows stay zero

    # ---- conv0 over relu(x): 3 banded MXU matmuls (bf16 operands, f32 acc) ----
    acc0 = jnp.broadcast_to(b0_ref[...], (H, L)).astype(jnp.float32)
    for ky in range(3):
        acc0 = acc0 + jnp.dot(rx[ky:ky + H, :].astype(jnp.bfloat16), w0_ref[ky],
                              preferred_element_type=jnp.float32)

    # ---- relu + vertical zero-pad of the mid tensor, kept in registers ----
    zrow = jnp.zeros((1, L), jnp.float32)
    midp = jnp.concatenate([zrow, jnp.maximum(acc0, 0.0), zrow], axis=0)  # (H+2, L)

    # ---- conv1 over relu(conv0(...)), fused residual add with original input ----
    acc1 = jnp.broadcast_to(b1_ref[...], (H, L)).astype(jnp.float32)
    for ky in range(3):
        acc1 = acc1 + jnp.dot(midp[ky:ky + H, :].astype(jnp.bfloat16), w1_ref[ky],
                              preferred_element_type=jnp.float32)

    o_ref[0] = (acc1 + xp[1:H + 1, :]).astype(o_ref.dtype)


def residual_block_forward(x_nchw, params):
    """Equivalent of ResidualBlock.forward (k_size=3). x: (N,C,H,W) f32 -> (N,C,H,W) f32."""
    w0b, b0r, w1b, b1r = params
    N, C, H, W = x_nchw.shape
    L = w0b.shape[-1]
    pack = L // (W * C)

    # Glue: NCHW -> lane-dense packed slabs (NP, H+2, L) with zero pad rows.
    x = jnp.transpose(x_nchw, (0, 2, 3, 1)).astype(jnp.float32).reshape(N, H, W * C)
    NE = ((N + pack - 1) // pack) * pack
    if NE != N:
        x = jnp.pad(x, ((0, NE - N), (0, 0), (0, 0)))
    NP = NE // pack
    x = x.reshape(NP, pack, H, W * C).transpose(0, 2, 1, 3).reshape(NP, H, L)
    x = jnp.pad(x, ((0, 0), (1, 1), (0, 0)))                 # (NP, H+2, L)

    kernel = functools.partial(_residual_block_kernel, H=H, L=L)
    out = pl.pallas_call(
        kernel,
        out_shape=jax.ShapeDtypeStruct((NP, H, L), jnp.float32),
        grid=(NP,),
        in_specs=[
            pl.BlockSpec((1, H + 2, L), lambda n: (n, 0, 0)),
            pl.BlockSpec((3, L, L), lambda n: (0, 0, 0)),
            pl.BlockSpec((1, L), lambda n: (0, 0)),
            pl.BlockSpec((3, L, L), lambda n: (0, 0, 0)),
            pl.BlockSpec((1, L), lambda n: (0, 0)),
        ],
        out_specs=pl.BlockSpec((1, H, L), lambda n: (n, 0, 0)),
        compiler_params=pltpu.CompilerParams(
            dimension_semantics=("parallel",)),   # packed pairs are fully independent
    )(x, w0b, b0r, w1b, b1r)

    # Unpack back to NCHW.
    y = out.reshape(NP, H, pack, W * C).transpose(0, 2, 1, 3).reshape(NE, H, W, C)
    return jnp.transpose(y[:N], (0, 3, 1, 2))


if __name__ == "__main__":
    key = jax.random.PRNGKey(0)
    k_x, k_w0, k_b0, k_w1, k_b1 = jax.random.split(key, 5)

    # ResidualBlock(channels=4), k_size=3.  N=4 -> 2 lane-packed pairs -> 2 parallel
    # grid steps (one per TensorCore on v7x).
    N, C, H, W = 4, 4, 16, 16
    K = 3

    x = jax.random.normal(k_x, (N, C, H, W), jnp.float32)
    fan_in = C * K * K
    bound = 1.0 / (fan_in ** 0.5)
    w0 = jax.random.uniform(k_w0, (C, C, K, K), jnp.float32, -bound, bound)
    b0 = jax.random.uniform(k_b0, (C,), jnp.float32, -bound, bound)
    w1 = jax.random.uniform(k_w1, (C, C, K, K), jnp.float32, -bound, bound)
    b1 = jax.random.uniform(k_b1, (C,), jnp.float32, -bound, bound)

    # Banded/packed weights built once (outside the hot forward path).
    params = prepare_residual_block_params(w0, b0, w1, b1, W=W, pack=PACK)

    fwd = jax.jit(residual_block_forward)
    out = jax.block_until_ready(fwd(x, params))

    # Plain-JAX reference with PyTorch semantics: relu -> conv0 -> relu -> conv1 -> + x.
    def conv(x_, w_, b_):
        return lax.conv_general_dilated(
            x_, w_, window_strides=(1, 1), padding=((1, 1), (1, 1)),
            dimension_numbers=("NCHW", "OIHW", "NCHW"),
            precision=lax.Precision.HIGHEST) + b_.reshape(1, -1, 1, 1)

    y = jnp.maximum(x, 0.0)
    y = conv(y, w0, b0)
    y = jnp.maximum(y, 0.0)
    y = conv(y, w1, b1)
    ref = y + x

    assert out.shape == (N, C, H, W), out.shape
    max_err = float(jnp.max(jnp.abs(out - ref)))
    # Tolerance covers bf16 MXU operands (f32 accumulate) vs the f32 HIGHEST reference.
    assert jnp.allclose(out, ref, atol=2e-2, rtol=1e-2), max_err
    print("KERNEL_OK")
</pallas_src>

<mosaic_0001>
module attributes {stable_mosaic.version = 11 : i64} {
  func.func @_residual_block_kernel(%arg0: i32, %arg1: memref<1x18x128xf32, #tpu.memory_space<vmem>>, %arg2: memref<3x128x128xbf16, #tpu.memory_space<vmem>>, %arg3: memref<1x128xf32, #tpu.memory_space<vmem>>, %arg4: memref<3x128x128xbf16, #tpu.memory_space<vmem>>, %arg5: memref<1x128xf32, #tpu.memory_space<vmem>>, %arg6: memref<1x16x128xf32, #tpu.memory_space<vmem>>) attributes {dimension_semantics = [#tpu.dimension_semantics<parallel>], iteration_bounds = array<i64: 2>, scalar_prefetch = 0 : i64, scratch_operands = 0 : i64, tpu.core_type = #tpu.core_type<tc>, window_params = [{transform_indices = @transform_0, window_bounds = array<i64: 1, 18, 128>}, {pipeline_mode = #tpu.pipeline_mode<synchronous>, transform_indices = @transform_1, window_bounds = array<i64: 3, 128, 128>}, {pipeline_mode = #tpu.pipeline_mode<synchronous>, transform_indices = @transform_2, window_bounds = array<i64: 1, 128>}, {pipeline_mode = #tpu.pipeline_mode<synchronous>, transform_indices = @transform_3, window_bounds = array<i64: 3, 128, 128>}, {pipeline_mode = #tpu.pipeline_mode<synchronous>, transform_indices = @transform_4, window_bounds = array<i64: 1, 128>}, {transform_indices = @transform_5, window_bounds = array<i64: 1, 16, 128>}]} {
    %c0 = arith.constant 0 : index
    %c0_0 = arith.constant 0 : index
    %c0_1 = arith.constant 0 : index
    %0 = vector.load %arg1[%c0, %c0_0, %c0_1] : memref<1x18x128xf32, #tpu.memory_space<vmem>>, vector<1x18x128xf32>
    %1 = vector.shape_cast %0 : vector<1x18x128xf32> to vector<18x128xf32>
    %cst = arith.constant 0.000000e+00 : f32
    %2 = vector.broadcast %cst : f32 to vector<18x128xf32>
    %3 = arith.maximumf %1, %2 : vector<18x128xf32>
    %c0_2 = arith.constant 0 : index
    %c0_3 = arith.constant 0 : index
    %4 = vector.load %arg3[%c0_2, %c0_3] : memref<1x128xf32, #tpu.memory_space<vmem>>, vector<1x128xf32>
    %5 = vector.shape_cast %4 : vector<1x128xf32> to vector<1x128xf32>
    %6 = vector.broadcast %5 : vector<1x128xf32> to vector<16x128xf32>
    %7 = vector.extract_strided_slice %3 {offsets = [0, 0], sizes = [16, 128], strides = [1, 1]} : vector<18x128xf32> to vector<16x128xf32>
    %8 = arith.truncf %7 : vector<16x128xf32> to vector<16x128xbf16>
    %c0_4 = arith.constant 0 : index
    %c0_5 = arith.constant 0 : index
    %c0_6 = arith.constant 0 : index
    %9 = vector.load %arg2[%c0_4, %c0_5, %c0_6] : memref<3x128x128xbf16, #tpu.memory_space<vmem>>, vector<1x128x128xbf16>
    %10 = vector.shape_cast %9 : vector<1x128x128xbf16> to vector<128x128xbf16>
    %cst_7 = arith.constant dense<0.000000e+00> : vector<16x128xf32>
    %11 = tpu.matmul %8, %10, %cst_7 {dimension_numbers = #tpu.dot_dimension_numbers<[1], [0], [0], [1], [0, 0, 1, 1], [], []>} : vector<16x128xbf16>, vector<128x128xbf16>, vector<16x128xf32> -> vector<16x128xf32>
    %12 = arith.addf %6, %11 : vector<16x128xf32>
    %13 = vector.extract_strided_slice %3 {offsets = [1, 0], sizes = [16, 128], strides = [1, 1]} : vector<18x128xf32> to vector<16x128xf32>
    %14 = arith.truncf %13 : vector<16x128xf32> to vector<16x128xbf16>
    %c1 = arith.constant 1 : index
    %c0_8 = arith.constant 0 : index
    %c0_9 = arith.constant 0 : index
    %15 = vector.load %arg2[%c1, %c0_8, %c0_9] : memref<3x128x128xbf16, #tpu.memory_space<vmem>>, vector<1x128x128xbf16>
    %16 = vector.shape_cast %15 : vector<1x128x128xbf16> to vector<128x128xbf16>
    %cst_10 = arith.constant dense<0.000000e+00> : vector<16x128xf32>
    %17 = tpu.matmul %14, %16, %cst_10 {dimension_numbers = #tpu.dot_dimension_numbers<[1], [0], [0], [1], [0, 0, 1, 1], [], []>} : vector<16x128xbf16>, vector<128x128xbf16>, vector<16x128xf32> -> vector<16x128xf32>
    %18 = arith.addf %12, %17 : vector<16x128xf32>
    %19 = vector.extract_strided_slice %3 {offsets = [2, 0], sizes = [16, 128], strides = [1, 1]} : vector<18x128xf32> to vector<16x128xf32>
    %20 = arith.truncf %19 : vector<16x128xf32> to vector<16x128xbf16>
    %c2 = arith.constant 2 : index
    %c0_11 = arith.constant 0 : index
    %c0_12 = arith.constant 0 : index
    %21 = vector.load %arg2[%c2, %c0_11, %c0_12] : memref<3x128x128xbf16, #tpu.memory_space<vmem>>, vector<1x128x128xbf16>
    %22 = vector.shape_cast %21 : vector<1x128x128xbf16> to vector<128x128xbf16>
    %cst_13 = arith.constant dense<0.000000e+00> : vector<16x128xf32>
    %23 = tpu.matmul %20, %22, %cst_13 {dimension_numbers = #tpu.dot_dimension_numbers<[1], [0], [0], [1], [0, 0, 1, 1], [], []>} : vector<16x128xbf16>, vector<128x128xbf16>, vector<16x128xf32> -> vector<16x128xf32>
    %24 = arith.addf %18, %23 : vector<16x128xf32>
    %cst_14 = arith.constant 0.000000e+00 : f32
    %25 = vector.broadcast %cst_14 : f32 to vector<1x128xf32>
    %cst_15 = arith.constant 0.000000e+00 : f32
    %26 = vector.broadcast %cst_15 : f32 to vector<16x128xf32>
    %27 = arith.maximumf %24, %26 : vector<16x128xf32>
    %28 = tpu.concatenate %25, %27, %25 in 0 : vector<1x128xf32>, vector<16x128xf32>, vector<1x128xf32> -> vector<18x128xf32>
    %c0_16 = arith.constant 0 : index
    %c0_17 = arith.constant 0 : index
    %29 = vector.load %arg5[%c0_16, %c0_17] : memref<1x128xf32, #tpu.memory_space<vmem>>, vector<1x128xf32>
    %30 = vector.shape_cast %29 : vector<1x128xf32> to vector<1x128xf32>
    %31 = vector.broadcast %30 : vector<1x128xf32> to vector<16x128xf32>
    %32 = vector.extract_strided_slice %28 {offsets = [0, 0], sizes = [16, 128], strides = [1, 1]} : vector<18x128xf32> to vector<16x128xf32>
    %33 = arith.truncf %32 : vector<16x128xf32> to vector<16x128xbf16>
    %c0_18 = arith.constant 0 : index
    %c0_19 = arith.constant 0 : index
    %c0_20 = arith.constant 0 : index
    %34 = vector.load %arg4[%c0_18, %c0_19, %c0_20] : memref<3x128x128xbf16, #tpu.memory_space<vmem>>, vector<1x128x128xbf16>
    %35 = vector.shape_cast %34 : vector<1x128x128xbf16> to vector<128x128xbf16>
    %cst_21 = arith.constant dense<0.000000e+00> : vector<16x128xf32>
    %36 = tpu.matmul %33, %35, %cst_21 {dimension_numbers = #tpu.dot_dimension_numbers<[1], [0], [0], [1], [0, 0, 1, 1], [], []>} : vector<16x128xbf16>, vector<128x128xbf16>, vector<16x128xf32> -> vector<16x128xf32>
    %37 = arith.addf %31, %36 : vector<16x128xf32>
    %38 = vector.extract_strided_slice %28 {offsets = [1, 0], sizes = [16, 128], strides = [1, 1]} : vector<18x128xf32> to vector<16x128xf32>
    %39 = arith.truncf %38 : vector<16x128xf32> to vector<16x128xbf16>
    %c1_22 = arith.constant 1 : index
    %c0_23 = arith.constant 0 : index
    %c0_24 = arith.constant 0 : index
    %40 = vector.load %arg4[%c1_22, %c0_23, %c0_24] : memref<3x128x128xbf16, #tpu.memory_space<vmem>>, vector<1x128x128xbf16>
    %41 = vector.shape_cast %40 : vector<1x128x128xbf16> to vector<128x128xbf16>
    %cst_25 = arith.constant dense<0.000000e+00> : vector<16x128xf32>
    %42 = tpu.matmul %39, %41, %cst_25 {dimension_numbers = #tpu.dot_dimension_numbers<[1], [0], [0], [1], [0, 0, 1, 1], [], []>} : vector<16x128xbf16>, vector<128x128xbf16>, vector<16x128xf32> -> vector<16x128xf32>
    %43 = arith.addf %37, %42 : vector<16x128xf32>
    %44 = vector.extract_strided_slice %28 {offsets = [2, 0], sizes = [16, 128], strides = [1, 1]} : vector<18x128xf32> to vector<16x128xf32>
    %45 = arith.truncf %44 : vector<16x128xf32> to vector<16x128xbf16>
    %c2_26 = arith.constant 2 : index
    %c0_27 = arith.constant 0 : index
    %c0_28 = arith.constant 0 : index
    %46 = vector.load %arg4[%c2_26, %c0_27, %c0_28] : memref<3x128x128xbf16, #tpu.memory_space<vmem>>, vector<1x128x128xbf16>
    %47 = vector.shape_cast %46 : vector<1x128x128xbf16> to vector<128x128xbf16>
    %cst_29 = arith.constant dense<0.000000e+00> : vector<16x128xf32>
    %48 = tpu.matmul %45, %47, %cst_29 {dimension_numbers = #tpu.dot_dimension_numbers<[1], [0], [0], [1], [0, 0, 1, 1], [], []>} : vector<16x128xbf16>, vector<128x128xbf16>, vector<16x128xf32> -> vector<16x128xf32>
    %49 = arith.addf %43, %48 : vector<16x128xf32>
    %50 = vector.extract_strided_slice %1 {offsets = [1, 0], sizes = [16, 128], strides = [1, 1]} : vector<18x128xf32> to vector<16x128xf32>
    %51 = arith.addf %49, %50 : vector<16x128xf32>
    %c0_30 = arith.constant 0 : index
    %c0_31 = arith.constant 0 : index
    %c0_32 = arith.constant 0 : index
    %52 = vector.load %arg6[%c0_30, %c0_31, %c0_32] : memref<1x16x128xf32, #tpu.memory_space<vmem>>, vector<1x16x128xf32>
    %53 = vector.shape_cast %52 : vector<1x16x128xf32> to vector<16x128xf32>
    %54 = vector.shape_cast %51 : vector<16x128xf32> to vector<1x16x128xf32>
    tpu.vector_store %arg6[%c0_30, %c0_31, %c0_32], %54 {strides = array<i32>} : memref<1x16x128xf32, #tpu.memory_space<vmem>>, vector<1x16x128xf32>,
    return
  }
  func.func @transform_0(%arg0: i32) -> (i32, i32, i32) {
    %c0_i32 = arith.constant 0 : i32
    %c0_i32_0 = arith.constant 0 : i32
    %c0_i32_1 = arith.constant 0 : i32
    return %arg0, %c0_i32, %c0_i32_0 : i32, i32, i32
  }
  func.func @transform_1(%arg0: i32) -> (i32, i32, i32) {
    %c0_i32 = arith.constant 0 : i32
    %c0_i32_0 = arith.constant 0 : i32
    %c0_i32_1 = arith.constant 0 : i32
    %c0_i32_2 = arith.constant 0 : i32
    return %c0_i32, %c0_i32_0, %c0_i32_1 : i32, i32, i32
  }
  func.func @transform_2(%arg0: i32) -> (i32, i32) {
    %c0_i32 = arith.constant 0 : i32
    %c0_i32_0 = arith.constant 0 : i32
    %c0_i32_1 = arith.constant 0 : i32
    return %c0_i32, %c0_i32_0 : i32, i32
  }
  func.func @transform_3(%arg0: i32) -> (i32, i32, i32) {
    %c0_i32 = arith.constant 0 : i32
    %c0_i32_0 = arith.constant 0 : i32
    %c0_i32_1 = arith.constant 0 : i32
    %c0_i32_2 = arith.constant 0 : i32
    return %c0_i32, %c0_i32_0, %c0_i32_1 : i32, i32, i32
  }
  func.func @transform_4(%arg0: i32) -> (i32, i32) {
    %c0_i32 = arith.constant 0 : i32
    %c0_i32_0 = arith.constant 0 : i32
    %c0_i32_1 = arith.constant 0 : i32
    return %c0_i32, %c0_i32_0 : i32, i32
  }
  func.func @transform_5(%arg0: i32) -> (i32, i32, i32) {
    %c0_i32 = arith.constant 0 : i32
    %c0_i32_0 = arith.constant 0 : i32
    %c0_i32_1 = arith.constant 0 : i32
    return %arg0, %c0_i32, %c0_i32_0 : i32, i32, i32
  }
}

</mosaic_0001>

<bundles_post_ra>
// kernel: residual_block_forward.1
= control target key start
LH: loop header
LB: loop body
LE: loop exit
PB: predicated region body
PF: predicated region fallthrough
CT: control target
= control target key end

     0   :  { %s1220_s18 = smov 0   ;;  %s1409_s0 = inlined_call_operand.vmem [shape: f32[2,18,128], index: 0, kind: input, shape index: {}]   ;;  %s1410_s1 = inlined_call_operand.vmem [shape: bf16[3,128,128], index: 1, kind: input, shape index: {}]   ;;  %s1411_s2 = inlined_call_operand.vmem [shape: f32[1,128], index: 2, kind: input, shape index: {}]   ;;  %s1412_s3 = inlined_call_operand.vmem [shape: bf16[3,128,128], index: 3, kind: input, shape index: {}]   ;;  %s1413_s4 = inlined_call_operand.vmem [shape: f32[1,128], index: 4, kind: input, shape index: {}]   ;;  %s1414_s5 = inlined_call_operand.vmem [shape: f32[2,16,128], index: 5, kind: output, shape index: {}]  }
   0x1 LB: > { %s850_s19 = sadd.s32 4294967295, %s1187_s18   ;;  %p854_p0 = scmp.ge.s32.totalorder %s1187_s18, 1  ;;  %s1187_s18 = sphi %s1220_s18, %s15_s18  }
   0x2   : > { %p187_p1 = scmp.lt.s32.totalorder %s1187_s18, 3 }
   0x4   : > { %p188_p2 = pnand %p854_p0, %p187_p1 }
   0x5   : > { %p215_p3 = scmp.lt.s32.totalorder (!%p188_p2), %s850_s19, 1 }
   0x6   : > { %191 = sbr.rel (%p188_p2) target bundleno = 343 (0x157), region = 40 }
   0xb   : > { %v1128_v0 = vld [vmem:[%s1410_s1 + $0x38] sm:$0xff]  ;;  %v1127_v3 = vld [vmem:[%s1410_s1 + $0x30] sm:$0xff]  ;;  %s1416_s19 = smov (!%p215_p3, %s850_s19), 1  ;;  %v1126_v6 = vld [vmem:[%s1410_s1 + $0x28] sm:$0xff]  ;;  %vm334_vm0 = vsmask.f32 7424 }
   0xc   : > { %v1136_v1 = vld [vmem:[%s1410_s1 + $0x78] sm:$0xff]  ;;  %300 = vmatpush.bf16.msra.mxu0 %v1128_v0  ;;  %v1135_v4 = vld [vmem:[%s1410_s1 + $0x70] sm:$0xff]  ;;  %s1169_s7 = smul.u32 24, %s1416_s19  ;;  %v1134_v7 = vld [vmem:[%s1410_s1 + $0x68] sm:$0xff]  ;;  %vm431_vm1 = vcmask 1046528   ;;  %vm504_vm2 = vcmask 1040384  }
   0xd   : > { %v1144_v2 = vld [vmem:[%s1410_s1 + $0xb8] sm:$0xff]  ;;  %396 = vmatpush.bf16.msra.mxu1 %v1136_v1  ;;  %v1143_v5 = vld [vmem:[%s1410_s1 + $0xb0] sm:$0xff]  ;;  %v1142_v8 = vld [vmem:[%s1410_s1 + $0xa8] sm:$0xff]  ;;  %vm1189_vm4 = vmmov 1  }
   0xe   : > { %484 = vmatpush.bf16.msra.mxu2 %v1144_v2  ;;  %s219_s14 = scalar_lea.vmem %s1409_s0, %s1169_s7  ;;  %v1125_v11 = vld [vmem:[%s1410_s1 + $0x20] sm:$0xff]  ;;  %v1152_v13 = vld [vmem:[%s1412_s3 + $0x38] sm:$0xff]  ;;  %v1151_v18 = vld [vmem:[%s1412_s3 + $0x30] sm:$0xff]  ;;  %s1120_s7 = sshll.u32 %s1416_s19, 4 }
   0xf   : > { %v1261_v9 = vld [vmem:[%s219_s14] sm:$0xff]  ;;  %v1263_v10 = vld [vmem:[%s219_s14 + $0x8] sm:$0xff]  ;;  %v1279_v17 = vld [vmem:[%s219_s14 + $0x10] sm:$0x3]  ;;  %582 = vmatpush.bf16.msra.mxu3 %v1152_v13  ;;  %s224_s10 = scalar_lea.vmem %s1414_s5, %s1120_s7 }
  0x10   : > { %301 = vmatpush.bf16.msra.mxu0 %v1127_v3  ;;  %v1133_v12 = vld [vmem:[%s1410_s1 + $0x60] sm:$0xff]  ;;  %v228_v14 = vmax.f32 %v1261_v9, 0.0  ;;  %v229_v15 = vmax.f32 %v1263_v10, 0.0  ;;  %v1124_v19 = vld [vmem:[%s1410_s1 + $0x18] sm:$0xff]  ;;  %v230_v22 = vmax.f32 %v1279_v17, 0.0  ;;  %v1123_v24 = vld [vmem:[%s1410_s1 + $0x10] sm:$0xff] }
  0x11   : > { %397 = vmatpush.bf16.msra.mxu1 %v1135_v4  ;;  %v1141_v16 = vld [vmem:[%s1410_s1 + $0xa0] sm:$0xff]  ;;  %v1132_v20 = vld [vmem:[%s1410_s1 + $0x58] sm:$0xff]  ;;  %v1131_v25 = vld [vmem:[%s1410_s1 + $0x50] sm:$0xff] }
  0x12   : > { %485 = vmatpush.bf16.msra.mxu2 %v1143_v5  ;;  %v235_v21 = vpack.c.bf16 %v229_v15, %v228_v14  ;;  %v1140_v23 = vld [vmem:[%s1410_s1 + $0x98] sm:$0xff]  ;;  %v316_v26 = vpack.c.bf16 %v230_v22, %v230_v22  ;;  %v1139_v28 = vld [vmem:[%s1410_s1 + $0x90] sm:$0xff]  ;;  %v1122_v29 = vld [vmem:[%s1410_s1 + $0x8] sm:$0xff] }
  0x13   : > { %583 = vmatpush.bf16.msra.mxu3 %v1151_v18  ;;  %v1130_v30 = vld [vmem:[%s1410_s1 + $0x48] sm:$0xff]  ;;  %v1121_v35 = vld [vmem:[%s1410_s1] sm:$0xff]  ;;  %v1168_v42 = vld [vmem:[%s1412_s3 + $0xb8] sm:$0xff] }
  0x14   : > { %302 = vmatpush.bf16.msra.mxu0 %v1126_v6  ;;  %v338_v27 = vshll.u32 %v235_v21, 16  ;;  %v336_v31 = vshrl.u32 %v235_v21, 16  ;;  %v343_v33 = vshll.u32 %v316_v26, 16  ;;  %v1138_v34 = vld [vmem:[%s1410_s1 + $0x88] sm:$0xff]  ;;  %v1129_v36 = vld [vmem:[%s1410_s1 + $0x40] sm:$0xff]  ;;  %v432_v40 = vrot.slane %v235_v21, 1  ;;  %vm1018_vm3 = vmneg %vm504_vm2 }
  0x15   : > { %398 = vmatpush.bf16.msra.mxu1 %v1134_v7  ;;  %v1137_v39 = vld [vmem:[%s1410_s1 + $0x80] sm:$0xff]  ;;  %v433_v41 = vrot.slane %v316_v26, 1  ;;  %v1160_v45 = vld [vmem:[%s1412_s3 + $0x78] sm:$0xff]  ;;  %v1167_v46 = vld [vmem:[%s1412_s3 + $0xb0] sm:$0xff] }
  0x16   : > { %486 = vmatpush.bf16.msra.mxu2 %v1142_v8  ;;  %v340_v32 = vrot.slane %v338_v27, 1  ;;  %v345_v38 = vrot.slane %v343_v33, 1  ;;  %v1150_v47 = vld [vmem:[%s1412_s3 + $0x28] sm:$0xff]  ;;  %v1159_v48 = vld [vmem:[%s1412_s3 + $0x70] sm:$0xff]  ;;  %v1149_v50 = vld [vmem:[%s1412_s3 + $0x20] sm:$0xff] }
  0x17   : > { %v434_v44 = vsel %vm431_vm1, %v432_v40, %v433_v41  ;;  %584 = vmatpush.bf16.msra.mxu3 %v1150_v47  ;;  %v1166_v49 = vld [vmem:[%s1412_s3 + $0xa8] sm:$0xff]  ;;  %v1165_v52 = vld [vmem:[%s1412_s3 + $0xa0] sm:$0xff]  ;;  %v1148_v53 = vld [vmem:[%s1412_s3 + $0x18] sm:$0xff]  ;;  %v784_v40 = vrot.slane %v1261_v9, 1  ;;  %v785_v41 = vrot.slane %v1263_v10, 1 }
  0x18   : > { %303 = vmatpush.bf16.msra.mxu0 %v1125_v11  ;;  %v341_v37 = vor.u32 %v340_v32, %v336_v31  ;;  %v1158_v51 = vld [vmem:[%s1412_s3 + $0x68] sm:$0xff]  ;;  %v1157_v54 = vld [vmem:[%s1412_s3 + $0x60] sm:$0xff]  ;;  %v1164_v55 = vld [vmem:[%s1412_s3 + $0x98] sm:$0xff] }
  0x19   : > { %399 = vmatpush.bf16.msra.mxu1 %v1133_v12  ;;  %v1147_v56 = vld [vmem:[%s1412_s3 + $0x10] sm:$0xff]  ;;  %v1156_v57 = vld [vmem:[%s1412_s3 + $0x58] sm:$0xff]  ;;  %v1146_v59 = vld [vmem:[%s1412_s3 + $0x8] sm:$0xff] }
  0x1a   : > { %487 = vmatpush.bf16.msra.mxu2 %v1141_v16  ;;  %v346_v43 = vsel %vm334_vm0, %v341_v37, %v345_v38  ;;  %v1163_v58 = vld [vmem:[%s1412_s3 + $0x90] sm:$0xff]  ;;  %v1162_v61 = vld [vmem:[%s1412_s3 + $0x88] sm:$0xff]  ;;  %v1145_v62 = vld [vmem:[%s1412_s3] sm:$0xff] }
  0x1b   : > { %585 = vmatpush.bf16.msra.mxu3 %v1149_v50  ;;  %v1155_v60 = vld [vmem:[%s1412_s3 + $0x50] sm:$0xff]  ;;  %v1154_v63 = vld [vmem:[%s1412_s3 + $0x48] sm:$0xff]  ;;  %v1161_v0 = vld [vmem:[%s1412_s3 + $0x80] sm:$0xff]  ;;  %v787_v50 = vrot.slane %v1279_v17, 1 }
  0x1c   : > { %304 = vmatpush.bf16.msra.mxu0 %v1124_v19  ;;  %v1153_v1 = vld [vmem:[%s1412_s3 + $0x40] sm:$0xff]  ;;  %vm1019_vm5 = vmpackc.low %vm1189_vm4, %vm1018_vm3 }
  0x1d   : > { %400 = vmatpush.bf16.msra.mxu1 %v1132_v20  ;;  %v1179_v2 = vld [vmem:[%s1411_s2] ss:$0 sm:$0xff] }
  0x1e   : > { %488 = vmatpush.bf16.msra.mxu2 %v1140_v23  ;;  %v1180_v38 = vld [vmem:[%s1413_s4] ss:$0 sm:$0xff] }
  0x1f   : > { %586 = vmatpush.bf16.msra.mxu3 %v1148_v53  ;;  %v788_v53 = vsel %vm431_vm1, %v785_v41, %v787_v50 }
  0x20   : > { %305 = vmatpush.bf16.msra.mxu0 %v1123_v24 }
  0x21   : > { %401 = vmatpush.bf16.msra.mxu1 %v1131_v25 }
  0x22   : > { %489 = vmatpush.bf16.msra.mxu2 %v1139_v28 }
  0x23   : > { %587 = vmatpush.bf16.msra.mxu3 %v1147_v56 }
  0x24   : > { %306 = vmatpush.bf16.msra.mxu0 %v1122_v29 }
  0x25   : > { %402 = vmatpush.bf16.msra.mxu1 %v1130_v30 }
  0x26   : > { %490 = vmatpush.bf16.msra.mxu2 %v1138_v34 }
  0x27   : > { %588 = vmatpush.bf16.msra.mxu3 %v1146_v59 }
  0x28   : > { %307 = vmatpush.bf16.msra.mxu0 %v1121_v35 }
  0x29   : > { %403 = vmatpush.bf16.msra.mxu1 %v1129_v36 }
  0x2a   : > { %491 = vmatpush.bf16.msra.mxu2 %v1137_v39 }
  0x2b   : > { %308 = vmatmul.bf16.vlgmr.msra.gmra.mxu0 %v235_v21  ;;  %589 = vmatpush.bf16.msra.mxu3 %v1145_v62 }
  0x2c   : > { %404 = vmatmul.bf16.vlgmr.msra.gmra.mxu1 %v346_v43  ;;  %677 = vmatpush.bf16.msrb.mxu0 %v1160_v45 }
  0x2d   : > { %764 = vmatpush.bf16.msrb.mxu1 %v1168_v42  ;;  %492 = vmatmul.bf16.vlgmr.msra.gmra.mxu2 %v434_v44 }
  0x30   : > { %678 = vmatpush.bf16.msrb.mxu0 %v1159_v48 }
  0x31   : > { %765 = vmatpush.bf16.msrb.mxu1 %v1167_v46  ;;  %v786_v46 = vsel %vm431_vm1, %v784_v40, %v785_v41 }
  0x34   : > { %679 = vmatpush.bf16.msrb.mxu0 %v1158_v51 }
  0x35   : > { %766 = vmatpush.bf16.msrb.mxu1 %v1166_v49 }
  0x38   : > { %680 = vmatpush.bf16.msrb.mxu0 %v1157_v54 }
  0x39   : > { %767 = vmatpush.bf16.msrb.mxu1 %v1165_v52 }
  0x3c   : > { %681 = vmatpush.bf16.msrb.mxu0 %v1156_v57 }
  0x3d   : > { %768 = vmatpush.bf16.msrb.mxu1 %v1164_v55 }
  0x40   : > { %682 = vmatpush.bf16.msrb.mxu0 %v1155_v60 }
  0x41   : > { %769 = vmatpush.bf16.msrb.mxu1 %v1163_v58 }
  0x44   : > { %683 = vmatpush.bf16.msrb.mxu0 %v1154_v63 }
  0x45   : > { %770 = vmatpush.bf16.msrb.mxu1 %v1162_v61 }
  0x48   : > { %684 = vmatpush.bf16.msrb.mxu0 %v1153_v1 }
  0x49   : > { %771 = vmatpush.bf16.msrb.mxu1 %v1161_v0 }
  0xa8   : > { %v309_v3 = vpop.f32.mrf.mxu0 }
  0xa9   : > { %v314_v4 = vadd.f32 %v1179_v2, %v309_v3  ;;  %v405_v5 = vpop.f32.mrf.mxu1 }
  0xab   : > { %v410_v6 = vadd.f32 %v405_v5, %v314_v4 }
  0xb0   : > { %v493_v7 = vpop.f32.mrf.mxu2  ;;  %v311_v8 = vpop.f32.mrf.mxu0 }
  0xb1   : > { %v498_v11 = vadd.f32 %v493_v7, %v410_v6  ;;  %v315_v12 = vadd.f32 %v1179_v2, %v311_v8  ;;  %v407_v13 = vpop.f32.mrf.mxu1 }
  0xb3   : > { %v500_v14 = vmax.f32 %v498_v11, 0.0  ;;  %v411_v15 = vadd.f32 %v407_v13, %v315_v12 }
  0xb5   : > { %v505_v19 = vrot.slane %v500_v14, 7 }
  0xb7   : > { %v511_v22 = vsel %vm504_vm2, 0.0, %v505_v19 }
  0xb8   : > { %v495_v16 = vpop.f32.mrf.mxu2 }
  0xb9   : > { %v499_v18 = vadd.f32 %v495_v16, %v411_v15 }
  0xbb   : > { %v501_v20 = vmax.f32 %v499_v18, 0.0 }
  0xbd   : > { %v506_v21 = vrot.slane %v501_v20, 7 }
  0xbf   : > { %v512_v23 = vsel %vm504_vm2, %v506_v21, 0.0  ;;  %v507_v24 = vsel %vm504_vm2, %v505_v19, %v506_v21 }
  0xc0   : > { %v598_v25 = vpack.c.bf16 %v512_v23, %v512_v23  ;;  %v517_v26 = vpack.c.bf16 %v507_v24, %v511_v22  ;;  %v1020_v27 = vpack.c.bf16 %v507_v24, %v505_v19 }
  0xc2   : > { %v713_v28 = vrot.slane %v598_v25, 1  ;;  %1021 = vmatmul.msk.bf16.vlgmr.msra.gmra.mxu3 %vm1019_vm5, %v1020_v27  ;;  %v712_v29 = vrot.slane %v517_v26, 1  ;;  %v624_v30 = vshll.u32 %v598_v25, 16  ;;  %v619_v31 = vshll.u32 %v517_v26, 16 }
  0xc3   : > { %v617_v33 = vshrl.u32 %v517_v26, 16 }
  0xc4   : > { %v714_v32 = vsel %vm431_vm1, %v712_v29, %v713_v28  ;;  %v621_v34 = vrot.slane %v619_v31, 1  ;;  %v626_v36 = vrot.slane %v624_v30, 1 }
  0xc5   : > { %772 = vmatmul.bf16.vlgmr.msrb.gmra.mxu1 %v714_v32 }
  0xc6   : > { %v622_v35 = vor.u32 %v621_v34, %v617_v33 }
  0xc8   : > { %v627_v37 = vsel %vm334_vm0, %v622_v35, %v626_v36 }
  0xc9   : > { %685 = vmatmul.bf16.vlgmr.msrb.gmra.mxu0 %v627_v37 }
 0x142   : > { %v773_v43 = vpop.f32.mrf.mxu1 }
 0x145   : > { %v591_v39 = vpop.f32.mrf.mxu3 }
 0x146   : > { %v596_v42 = vadd.f32 %v1180_v38, %v591_v39  ;;  %v686_v44 = vpop.f32.mrf.mxu0 }
 0x148   : > { %v691_v45 = vadd.f32 %v686_v44, %v596_v42 }
 0x14a   : > { %v778_v47 = vadd.f32 %v773_v43, %v691_v45  ;;  %v775_v52 = vpop.f32.mrf.mxu1 }
 0x14c   : > { %v791_v48 = vadd.f32 %v786_v46, %v778_v47 }
 0x14d   : > { %v593_v49 = vpop.f32.mrf.mxu3 }
 0x14e   : > { %793 = vst [vmem:[%s224_s10] sm:$0xff] %v791_v48  ;;  %v597_v9 = vadd.f32 %v1180_v38, %v593_v49  ;;  %v688_v51 = vpop.f32.mrf.mxu0 }
 0x150   : > { %v692_v10 = vadd.f32 %v688_v51, %v597_v9 }
 0x152   : > { %v779_v54 = vadd.f32 %v775_v52, %v692_v10 }
 0x154   : > { %v792_v55 = vadd.f32 %v788_v53, %v779_v54 }
 0x156   : > { %794 = vst [vmem:[%s224_s10 + $0x8] sm:$0xff] %v792_v55 }
 0x157 PF: > { %s15_s18 = sadd.s32 1, %s1187_s18  }
 0x158   : > { %p12_p4 = scmp.ge.s32.totalorder %s15_s18, 4  }
 0x15a   :  { %14 = sbr.rel (!%p12_p4) target bundleno = 1 (0x1), region = 74 }

</bundles_post_ra>
